<compile_context>
chip_gen: v7x
topology: tpu7x:2x2x1
jax: 0.10.0
libtpu: 0.0.40
codegen_flags: <defaults>
</compile_context>

<pallas_src>
import jax
import jax.numpy as jnp
from jax import lax
from jax.experimental import pallas as pl
from jax.experimental.pallas import tpu as pltpu


def _round_up(v, m):
    return ((v + m - 1) // m) * m


# ----------------------- fused conv(3x3) + PReLU kernel ----------------------
def _fused_conv_prelu_kernel(cols_ref, w_ref, b_ref, x_ref, a_ref,
                             conv_ref, act_ref):
    # cols_ref: (TILE_M, KPAD)   im2col rows (zero-padded K), lane-dense
    # w_ref   : (KPAD, CPAD)     zero-padded weight matrix (resident)
    # b_ref   : (1, CPAD)        zero-padded bias (resident)
    # x_ref   : (RX, 128)        flattened x (resident)
    # a_ref   : (1,) SMEM        PReLU slope
    # conv_ref: (TILE_M, CPAD)   lane-dense conv output slab
    # act_ref : (RX, 128)        PReLU(x) slab (resident, written once)

    # single MXU matmul, f32 accumulation
    acc = jnp.dot(cols_ref[...], w_ref[...],
                  preferred_element_type=jnp.float32)
    acc = acc + b_ref[...]                      # (1, CPAD) broadcasts over rows
    conv_ref[...] = acc.astype(conv_ref.dtype)

    # fused PReLU epilogue on the whole (small) flattened-x slab; write once.
    @pl.when(pl.program_id(0) == 0)
    def _():
        a = a_ref[0]
        xv = x_ref[...]
        act_ref[...] = jnp.where(xv >= 0, xv, a * xv).astype(act_ref.dtype)


def subpixel_forward(x_nchw, w_oihw, b, a):
    """Returns (prelu(x), conv3x3_same(x)) with one fused pallas_call."""
    N, Cin, H, W = x_nchw.shape
    Cout = w_oihw.shape[0]
    dt = x_nchw.dtype

    # ---- im2col (single fused XLA op chain; tap-major, cin-minor columns) ---
    x_nhwc = jnp.transpose(x_nchw, (0, 2, 3, 1))
    xp = jnp.pad(x_nhwc, ((0, 0), (1, 1), (1, 1), (0, 0)))
    taps = [xp[:, ky:ky + H, kx:kx + W, :]
            for ky in range(3) for kx in range(3)]
    cols = jnp.concatenate(taps, axis=-1).reshape(N * H * W, 9 * Cin)

    K = 9 * Cin
    KPAD = _round_up(max(K, 128), 128)          # lane-dense contraction dim
    CPAD = _round_up(max(Cout, 128), 128)       # lane-dense (unmasked) stores
    M = N * H * W
    TILE_M = min(512, _round_up(M, 8))
    M_PAD = _round_up(M, TILE_M)

    cols_p = jnp.pad(cols, ((0, M_PAD - M), (0, KPAD - K)))

    # weight rows ordered (ky, kx, cin) to match the im2col column order
    wmat = jnp.transpose(w_oihw, (2, 3, 1, 0)).reshape(K, Cout)
    wmat_p = jnp.pad(wmat, ((0, KPAD - K), (0, CPAD - Cout))).astype(dt)
    bias_p = jnp.pad(b, (0, CPAD - Cout)).reshape(1, CPAD).astype(dt)

    # ---- flattened, 128-lane-padded view of x for the fused PReLU ----------
    total = N * Cin * H * W
    LANES = 128
    total_pad = _round_up(total, LANES * 8)
    x_flat = jnp.pad(x_nchw.reshape(-1), (0, total_pad - total))
    x2 = x_flat.reshape(total_pad // LANES, LANES)
    RX = x2.shape[0]
    # NOTE: the flattened-x slab is kept resident in VMEM (tiny for this
    # module); for very large activations tile it over the grid instead.

    grid = (M_PAD // TILE_M,)

    # conservative VMEM budget (double-buffered conv tiles + resident slabs)
    vmem_bytes = (2 * TILE_M * KPAD * 4 + 2 * TILE_M * CPAD * 4
                  + KPAD * CPAD * 4 + CPAD * 4 + 2 * RX * LANES * 4)
    vmem_limit = int(min(64 * 1024 * 1024,
                         max(16 * 1024 * 1024, 2 * vmem_bytes)))

    conv_slab, act2 = pl.pallas_call(
        _fused_conv_prelu_kernel,
        out_shape=(jax.ShapeDtypeStruct((M_PAD, CPAD), dt),
                   jax.ShapeDtypeStruct((RX, LANES), dt)),
        grid_spec=pltpu.PrefetchScalarGridSpec(
            num_scalar_prefetch=0,
            grid=grid,
            in_specs=[
                pl.BlockSpec((TILE_M, KPAD), lambda i: (i, 0)),   # im2col rows
                pl.BlockSpec((KPAD, CPAD), lambda i: (0, 0)),     # weights
                pl.BlockSpec((1, CPAD), lambda i: (0, 0)),        # bias
                pl.BlockSpec((RX, LANES), lambda i: (0, 0)),      # flat x
                pl.BlockSpec(memory_space=pltpu.SMEM),            # slope a
            ],
            out_specs=[
                pl.BlockSpec((TILE_M, CPAD), lambda i: (i, 0)),   # conv slab
                pl.BlockSpec((RX, LANES), lambda i: (0, 0)),      # prelu slab
            ],
        ),
        compiler_params=pltpu.CompilerParams(
            dimension_semantics=("arbitrary",),
            vmem_limit_bytes=vmem_limit,
        ),
    )(cols_p, wmat_p, bias_p, x2, a)

    conv_out = conv_slab[:M, :Cout].reshape(N, H, W, Cout)
    conv_out = jnp.transpose(conv_out, (0, 3, 1, 2))              # NCHW
    act = act2.reshape(-1)[:total].reshape(N, Cin, H, W)
    return act, conv_out


# ------------------------------ pixel shuffle --------------------------------
def pixel_shuffle(x_nchw, r):
    # Pure layout plumbing (no compute, result discarded) -> plain JAX.
    N, C, H, W = x_nchw.shape
    Cout = C // (r * r)
    x = x_nchw.reshape(N, Cout, r, r, H, W)
    x = jnp.transpose(x, (0, 1, 4, 2, 5, 3))
    return x.reshape(N, Cout, H * r, W * r)


# --------------------------------- module ------------------------------------
class SubPixelPallas:
    def __init__(self, channel_in, scale, key):
        k1, k2 = jax.random.split(key, 2)
        cout = channel_in * scale
        fan_in = channel_in * 3 * 3
        bound = 1.0 / (fan_in ** 0.5)
        # deterministic synthetic init (PyTorch-default-like uniform)
        self.w = jax.random.uniform(k1, (cout, channel_in, 3, 3),
                                    jnp.float32, -bound, bound)
        self.b = jax.random.uniform(k2, (cout,), jnp.float32, -bound, bound)
        self.a = jnp.array([0.25], jnp.float32)   # nn.PReLU() default slope
        self.scale = scale
        self._fwd = jax.jit(subpixel_forward)

    def __call__(self, x):
        # Reference forward overwrites `output`; only PReLU(x) is returned.
        out, conv_out = self._fwd(x, self.w, self.b, self.a)
        shuf_out = pixel_shuffle(x, self.scale)          # discarded
        return out, conv_out, shuf_out


if __name__ == "__main__":
    key = jax.random.PRNGKey(0)
    k_in, k_mod = jax.random.split(key)

    N, C, H, W = 2, 4, 16, 16
    scale = 2
    x = jax.random.normal(k_in, (N, C, H, W), jnp.float32)

    mod = SubPixelPallas(channel_in=C, scale=scale, key=k_mod)
    out, conv_out, shuf_out = mod(x)
    out = jax.block_until_ready(out)
    conv_out = jax.block_until_ready(conv_out)
    jax.block_until_ready(shuf_out)

    # returned value must equal PReLU(x) (reference semantics)
    ref = jnp.where(x >= 0, x, 0.25 * x)
    assert out.shape == x.shape and out.dtype == x.dtype
    assert jnp.allclose(out, ref, atol=1e-6), "PReLU mismatch"

    # discarded-branch sanity: conv values vs XLA conv, shapes vs PyTorch
    ref_conv = lax.conv_general_dilated(
        x, mod.w, window_strides=(1, 1), padding=((1, 1), (1, 1)),
        dimension_numbers=("NCHW", "OIHW", "NCHW"),
        precision=lax.Precision.HIGHEST) + mod.b.reshape(1, -1, 1, 1)
    assert conv_out.shape == (N, C * scale, H, W)
    assert jnp.allclose(conv_out, ref_conv, atol=5e-3, rtol=5e-3), "conv mismatch"
    assert shuf_out.shape == (N, C // (scale * scale), H * scale, W * scale)

    print("KERNEL_OK")
</pallas_src>

<mosaic_0001>
module attributes {stable_mosaic.version = 11 : i64} {
  func.func @_fused_conv_prelu_kernel(%arg0: i32, %arg1: memref<512x128xf32, #tpu.memory_space<vmem>>, %arg2: memref<128x128xf32, #tpu.memory_space<vmem>>, %arg3: memref<1x128xf32, #tpu.memory_space<vmem>>, %arg4: memref<16x128xf32, #tpu.memory_space<vmem>>, %arg5: memref<1xf32, #tpu.memory_space<smem>>, %arg6: memref<512x128xf32, #tpu.memory_space<vmem>>, %arg7: memref<16x128xf32, #tpu.memory_space<vmem>>) attributes {dimension_semantics = [#tpu.dimension_semantics<arbitrary>], iteration_bounds = array<i64: 1>, scalar_prefetch = 0 : i64, scratch_operands = 0 : i64, tpu.core_type = #tpu.core_type<tc>, window_params = [{transform_indices = @transform_0, window_bounds = array<i64: 512, 128>}, {pipeline_mode = #tpu.pipeline_mode<synchronous>, transform_indices = @transform_1, window_bounds = array<i64: 128, 128>}, {pipeline_mode = #tpu.pipeline_mode<synchronous>, transform_indices = @transform_2, window_bounds = array<i64: 1, 128>}, {pipeline_mode = #tpu.pipeline_mode<synchronous>, transform_indices = @transform_3, window_bounds = array<i64: 16, 128>}, {transform_indices = @transform_4, window_bounds = array<i64: 1>}, {transform_indices = @transform_5, window_bounds = array<i64: 512, 128>}, {pipeline_mode = #tpu.pipeline_mode<synchronous>, transform_indices = @transform_6, window_bounds = array<i64: 16, 128>}]} {
    %c0 = arith.constant 0 : index
    %c0_0 = arith.constant 0 : index
    %0 = vector.load %arg1[%c0, %c0_0] : memref<512x128xf32, #tpu.memory_space<vmem>>, vector<512x128xf32>
    %c0_1 = arith.constant 0 : index
    %c0_2 = arith.constant 0 : index
    %1 = vector.load %arg2[%c0_1, %c0_2] : memref<128x128xf32, #tpu.memory_space<vmem>>, vector<128x128xf32>
    %cst = arith.constant dense<0.000000e+00> : vector<512x128xf32>
    %2 = tpu.matmul %0, %1, %cst {dimension_numbers = #tpu.dot_dimension_numbers<[1], [0], [0], [1], [0, 0, 1, 1], [], []>} : vector<512x128xf32>, vector<128x128xf32>, vector<512x128xf32> -> vector<512x128xf32>
    %c0_3 = arith.constant 0 : index
    %c0_4 = arith.constant 0 : index
    %3 = vector.load %arg3[%c0_3, %c0_4] : memref<1x128xf32, #tpu.memory_space<vmem>>, vector<1x128xf32>
    %4 = vector.broadcast %3 : vector<1x128xf32> to vector<512x128xf32>
    %5 = arith.addf %2, %4 : vector<512x128xf32>
    %c0_5 = arith.constant 0 : index
    %c0_6 = arith.constant 0 : index
    %6 = vector.load %arg6[%c0_5, %c0_6] : memref<512x128xf32, #tpu.memory_space<vmem>>, vector<512x128xf32>
    tpu.vector_store %arg6[%c0_5, %c0_6], %5 {strides = array<i32>} : memref<512x128xf32, #tpu.memory_space<vmem>>, vector<512x128xf32>,
    %c0_i32 = arith.constant 0 : i32
    %7 = arith.cmpi eq, %arg0, %c0_i32 : i32
    %8 = arith.extui %7 : i1 to i32
    %c0_i32_7 = arith.constant 0 : i32
    %9 = arith.cmpi ne, %8, %c0_i32_7 : i32
    scf.if %9 {
      %c0_8 = arith.constant 0 : index
      %10 = memref.load %arg5[%c0_8] : memref<1xf32, #tpu.memory_space<smem>>
      %c0_9 = arith.constant 0 : index
      %c0_10 = arith.constant 0 : index
      %11 = vector.load %arg4[%c0_9, %c0_10] : memref<16x128xf32, #tpu.memory_space<vmem>>, vector<16x128xf32>
      %cst_11 = arith.constant 0.000000e+00 : f32
      %12 = vector.broadcast %cst_11 : f32 to vector<16x128xf32>
      %13 = arith.cmpf oge, %11, %12 : vector<16x128xf32>
      %14 = vector.broadcast %10 : f32 to vector<16x128xf32>
      %15 = arith.mulf %14, %11 : vector<16x128xf32>
      %16 = arith.select %13, %11, %15 : vector<16x128xi1>, vector<16x128xf32>
      %c0_12 = arith.constant 0 : index
      %c0_13 = arith.constant 0 : index
      %17 = vector.load %arg7[%c0_12, %c0_13] : memref<16x128xf32, #tpu.memory_space<vmem>>, vector<16x128xf32>
      tpu.vector_store %arg7[%c0_12, %c0_13], %16 {strides = array<i32>} : memref<16x128xf32, #tpu.memory_space<vmem>>, vector<16x128xf32>,
    } else {
    }
    return
  }
  func.func @transform_0(%arg0: i32) -> (i32, i32) {
    %c0_i32 = arith.constant 0 : i32
    %c0_i32_0 = arith.constant 0 : i32
    return %arg0, %c0_i32 : i32, i32
  }
  func.func @transform_1(%arg0: i32) -> (i32, i32) {
    %c0_i32 = arith.constant 0 : i32
    %c0_i32_0 = arith.constant 0 : i32
    %c0_i32_1 = arith.constant 0 : i32
    return %c0_i32, %c0_i32_0 : i32, i32
  }
  func.func @transform_2(%arg0: i32) -> (i32, i32) {
    %c0_i32 = arith.constant 0 : i32
    %c0_i32_0 = arith.constant 0 : i32
    %c0_i32_1 = arith.constant 0 : i32
    return %c0_i32, %c0_i32_0 : i32, i32
  }
  func.func @transform_3(%arg0: i32) -> (i32, i32) {
    %c0_i32 = arith.constant 0 : i32
    %c0_i32_0 = arith.constant 0 : i32
    %c0_i32_1 = arith.constant 0 : i32
    return %c0_i32, %c0_i32_0 : i32, i32
  }
  func.func @transform_4(%arg0: i32) -> i32 {
    %c0_i32 = arith.constant 0 : i32
    %c0_i32_0 = arith.constant 0 : i32
    return %c0_i32 : i32
  }
  func.func @transform_5(%arg0: i32) -> (i32, i32) {
    %c0_i32 = arith.constant 0 : i32
    %c0_i32_0 = arith.constant 0 : i32
    return %arg0, %c0_i32 : i32, i32
  }
  func.func @transform_6(%arg0: i32) -> (i32, i32) {
    %c0_i32 = arith.constant 0 : i32
    %c0_i32_0 = arith.constant 0 : i32
    %c0_i32_1 = arith.constant 0 : i32
    return %c0_i32, %c0_i32_0 : i32, i32
  }
}

</mosaic_0001>

<bundles_post_ra>
// kernel: subpixel_forward.1
= control target key start
LH: loop header
LB: loop body
LE: loop exit
PB: predicated region body
PF: predicated region fallthrough
CT: control target
= control target key end

     0   :  { %s1391_s1 = inlined_call_operand.vmem [shape: f32[128,128], index: 1, kind: input, shape index: {}]   ;;  %s1392_s0 = inlined_call_operand.vmem [shape: f32[512,128], index: 0, kind: input, shape index: {}]   ;;  %s1393_s3 = inlined_call_operand.vmem [shape: f32[16,128], index: 3, kind: input, shape index: {}]   ;;  %s1394_s4 = inlined_call_operand.<no memory space> [shape: f32[1], index: 4, kind: input, shape index: {}]   ;;  %s1395_s6 = inlined_call_operand.vmem [shape: f32[16,128], index: 6, kind: output, shape index: {1}]   ;;  %s1396_s2 = inlined_call_operand.vmem [shape: f32[1,128], index: 2, kind: input, shape index: {}]   ;;  %s1397_s5 = inlined_call_operand.vmem [shape: f32[512,128], index: 5, kind: output, shape index: {0}]  }
   0x1   :  { %v87_v0 = vld [vmem:[%s1391_s1] sm:$0xff]  ;;  %v88_v1 = vld [vmem:[%s1391_s1 + $0x8] sm:$0xff]  ;;  %v89_v2 = vld [vmem:[%s1391_s1 + $0x10] sm:$0xff] }
   0x2   :  { %v792_v3 = vpack.c.bf16 %v88_v1, %v87_v0  ;;  %v90_v4 = vld [vmem:[%s1391_s1 + $0x18] sm:$0xff]  ;;  %v91_v6 = vld [vmem:[%s1391_s1 + $0x20] sm:$0xff]  ;;  %v92_v7 = vld [vmem:[%s1391_s1 + $0x28] sm:$0xff] }
   0x3   :  { %v796_v5 = vpack.c.bf16 %v90_v4, %v89_v2  ;;  %v800_v8 = vpack.c.bf16 %v92_v7, %v91_v6  ;;  %v23_v9 = vld [vmem:[%s1392_s0] sm:$0xff]  ;;  %v93_v11 = vld [vmem:[%s1391_s1 + $0x30] sm:$0xff]  ;;  %v94_v12 = vld [vmem:[%s1391_s1 + $0x38] sm:$0xff] }
   0x4   :  { %793 = vmatprep.subr.bf16.mxu0 %v792_v3  ;;  %824 = vmatprep.subr.bf16.mxu1 %v792_v3  ;;  %v55_v10 = vld [vmem:[%s1392_s0 + $0x100] sm:$0xff]  ;;  %v804_v13 = vpack.c.bf16 %v94_v12, %v93_v11  ;;  %v96_v15 = vld [vmem:[%s1391_s1 + $0x48] sm:$0xff]  ;;  %v97_v17 = vld [vmem:[%s1391_s1 + $0x50] sm:$0xff] }
   0x5   :  { %795 = vmatpush3.bf16.msra.mxu0 %v792_v3  ;;  %832 = vmatpush3.bf16.msra.mxu1 %v792_v3  ;;  %v95_v14 = vld [vmem:[%s1391_s1 + $0x40] sm:$0xff]  ;;  %v98_v18 = vld [vmem:[%s1391_s1 + $0x58] sm:$0xff]  ;;  %v100_v21 = vld [vmem:[%s1391_s1 + $0x68] sm:$0xff] }
   0x6   :  { %797 = vmatprep.subr.bf16.mxu0 %v796_v5  ;;  %825 = vmatprep.subr.bf16.mxu1 %v796_v5  ;;  %v808_v16 = vpack.c.bf16 %v96_v15, %v95_v14  ;;  %v812_v19 = vpack.c.bf16 %v98_v18, %v97_v17  ;;  %v99_v20 = vld [vmem:[%s1391_s1 + $0x60] sm:$0xff]  ;;  %v101_v23 = vld [vmem:[%s1391_s1 + $0x70] sm:$0xff]  ;;  %v102_v24 = vld [vmem:[%s1391_s1 + $0x78] sm:$0xff] }
   0x7   :  { %696 = vmatprep.mubr.f32.mxu0 %v23_v9  ;;  %744 = vmatprep.mubr.f32.mxu1 %v55_v10  ;;  %v816_v22 = vpack.c.bf16 %v100_v21, %v99_v20  ;;  %v820_v25 = vpack.c.bf16 %v102_v24, %v101_v23  ;;  %v24_v26 = vld [vmem:[%s1392_s0 + $0x8] sm:$0xff]  ;;  %v25_v28 = vld [vmem:[%s1392_s0 + $0x10] sm:$0xff]  ;;  %v26_v30 = vld [vmem:[%s1392_s0 + $0x18] sm:$0xff] }
   0x8   :  { %v56_v27 = vld [vmem:[%s1392_s0 + $0x108] sm:$0xff]  ;;  %v57_v29 = vld [vmem:[%s1392_s0 + $0x110] sm:$0xff]  ;;  %v58_v31 = vld [vmem:[%s1392_s0 + $0x118] sm:$0xff] }
   0x9   :  { %799 = vmatpush3.bf16.msra.mxu0 %v796_v5  ;;  %833 = vmatpush3.bf16.msra.mxu1 %v796_v5  ;;  %v27_v32 = vld [vmem:[%s1392_s0 + $0x20] sm:$0xff]  ;;  %v28_v34 = vld [vmem:[%s1392_s0 + $0x28] sm:$0xff]  ;;  %v29_v36 = vld [vmem:[%s1392_s0 + $0x30] sm:$0xff] }
   0xa   :  { %801 = vmatprep.subr.bf16.mxu0 %v800_v8  ;;  %826 = vmatprep.subr.bf16.mxu1 %v800_v8  ;;  %v59_v33 = vld [vmem:[%s1392_s0 + $0x120] sm:$0xff]  ;;  %v60_v35 = vld [vmem:[%s1392_s0 + $0x128] sm:$0xff]  ;;  %v61_v37 = vld [vmem:[%s1392_s0 + $0x130] sm:$0xff] }
   0xb   :  { %v30_v38 = vld [vmem:[%s1392_s0 + $0x38] sm:$0xff]  ;;  %v31_v40 = vld [vmem:[%s1392_s0 + $0x40] sm:$0xff]  ;;  %v32_v42 = vld [vmem:[%s1392_s0 + $0x48] sm:$0xff] }
   0xc   :  { %v62_v39 = vld [vmem:[%s1392_s0 + $0x138] sm:$0xff]  ;;  %v63_v41 = vld [vmem:[%s1392_s0 + $0x140] sm:$0xff]  ;;  %v64_v43 = vld [vmem:[%s1392_s0 + $0x148] sm:$0xff] }
   0xd   :  { %803 = vmatpush3.bf16.msra.mxu0 %v800_v8  ;;  %834 = vmatpush3.bf16.msra.mxu1 %v800_v8  ;;  %v33_v44 = vld [vmem:[%s1392_s0 + $0x50] sm:$0xff]  ;;  %v34_v46 = vld [vmem:[%s1392_s0 + $0x58] sm:$0xff]  ;;  %v35_v48 = vld [vmem:[%s1392_s0 + $0x60] sm:$0xff] }
   0xe   :  { %805 = vmatprep.subr.bf16.mxu0 %v804_v13  ;;  %827 = vmatprep.subr.bf16.mxu1 %v804_v13  ;;  %v65_v45 = vld [vmem:[%s1392_s0 + $0x150] sm:$0xff]  ;;  %v66_v47 = vld [vmem:[%s1392_s0 + $0x158] sm:$0xff]  ;;  %v67_v49 = vld [vmem:[%s1392_s0 + $0x160] sm:$0xff] }
   0xf   :  { %v36_v50 = vld [vmem:[%s1392_s0 + $0x68] sm:$0xff]  ;;  %v37_v52 = vld [vmem:[%s1392_s0 + $0x70] sm:$0xff]  ;;  %v38_v54 = vld [vmem:[%s1392_s0 + $0x78] sm:$0xff] }
  0x10   :  { %v68_v51 = vld [vmem:[%s1392_s0 + $0x168] sm:$0xff]  ;;  %v69_v53 = vld [vmem:[%s1392_s0 + $0x170] sm:$0xff]  ;;  %v70_v55 = vld [vmem:[%s1392_s0 + $0x178] sm:$0xff] }
  0x11   :  { %807 = vmatpush3.bf16.msra.mxu0 %v804_v13  ;;  %835 = vmatpush3.bf16.msra.mxu1 %v804_v13  ;;  %v39_v56 = vld [vmem:[%s1392_s0 + $0x80] sm:$0xff]  ;;  %v40_v58 = vld [vmem:[%s1392_s0 + $0x88] sm:$0xff]  ;;  %v41_v60 = vld [vmem:[%s1392_s0 + $0x90] sm:$0xff] }
  0x12   :  { %809 = vmatprep.subr.bf16.mxu0 %v808_v16  ;;  %828 = vmatprep.subr.bf16.mxu1 %v808_v16  ;;  %v71_v57 = vld [vmem:[%s1392_s0 + $0x180] sm:$0xff]  ;;  %v72_v59 = vld [vmem:[%s1392_s0 + $0x188] sm:$0xff]  ;;  %v73_v61 = vld [vmem:[%s1392_s0 + $0x190] sm:$0xff] }
  0x13   :  { %v42_v62 = vld [vmem:[%s1392_s0 + $0x98] sm:$0xff]  ;;  %v43_v0 = vld [vmem:[%s1392_s0 + $0xa0] sm:$0xff]  ;;  %v44_v2 = vld [vmem:[%s1392_s0 + $0xa8] sm:$0xff] }
  0x14   :  { %v74_v63 = vld [vmem:[%s1392_s0 + $0x198] sm:$0xff]  ;;  %v75_v1 = vld [vmem:[%s1392_s0 + $0x1a0] sm:$0xff]  ;;  %v76_v3 = vld [vmem:[%s1392_s0 + $0x1a8] sm:$0xff] }
  0x15   :  { %811 = vmatpush3.bf16.msra.mxu0 %v808_v16  ;;  %836 = vmatpush3.bf16.msra.mxu1 %v808_v16  ;;  %v45_v4 = vld [vmem:[%s1392_s0 + $0xb0] sm:$0xff]  ;;  %v46_v6 = vld [vmem:[%s1392_s0 + $0xb8] sm:$0xff]  ;;  %v47_v8 = vld [vmem:[%s1392_s0 + $0xc0] sm:$0xff] }
  0x16   :  { %813 = vmatprep.subr.bf16.mxu0 %v812_v19  ;;  %829 = vmatprep.subr.bf16.mxu1 %v812_v19  ;;  %v77_v5 = vld [vmem:[%s1392_s0 + $0x1b0] sm:$0xff]  ;;  %v78_v7 = vld [vmem:[%s1392_s0 + $0x1b8] sm:$0xff]  ;;  %v79_v9 = vld [vmem:[%s1392_s0 + $0x1c0] sm:$0xff] }
  0x17   :  { %v48_v10 = vld [vmem:[%s1392_s0 + $0xc8] sm:$0xff]  ;;  %v49_v12 = vld [vmem:[%s1392_s0 + $0xd0] sm:$0xff]  ;;  %v50_v14 = vld [vmem:[%s1392_s0 + $0xd8] sm:$0xff] }
  0x18   :  { %v80_v11 = vld [vmem:[%s1392_s0 + $0x1c8] sm:$0xff]  ;;  %v81_v13 = vld [vmem:[%s1392_s0 + $0x1d0] sm:$0xff]  ;;  %v82_v15 = vld [vmem:[%s1392_s0 + $0x1d8] sm:$0xff] }
  0x19   :  { %815 = vmatpush3.bf16.msra.mxu0 %v812_v19  ;;  %837 = vmatpush3.bf16.msra.mxu1 %v812_v19  ;;  %v51_v16 = vld [vmem:[%s1392_s0 + $0xe0] sm:$0xff]  ;;  %v52_v18 = vld [vmem:[%s1392_s0 + $0xe8] sm:$0xff]  ;;  %v53_v20 = vld [vmem:[%s1392_s0 + $0xf0] sm:$0xff] }
  0x1a   :  { %817 = vmatprep.subr.bf16.mxu0 %v816_v22  ;;  %830 = vmatprep.subr.bf16.mxu1 %v816_v22  ;;  %v83_v17 = vld [vmem:[%s1392_s0 + $0x1e0] sm:$0xff]  ;;  %v84_v19 = vld [vmem:[%s1392_s0 + $0x1e8] sm:$0xff]  ;;  %v85_v21 = vld [vmem:[%s1392_s0 + $0x1f0] sm:$0xff] }
  0x1b   :  { %v86_v23 = vld [vmem:[%s1392_s0 + $0x1f8] sm:$0xff]  ;;  %v564_v24 = vld [vmem:[%s1393_s3] sm:$0xff] }
  0x1c   :  { %vm566_vm0 = vcmp.ge.f32.partialorder %v564_v24, 0.0 }
  0x1d   :  { %819 = vmatpush3.bf16.msra.mxu0 %v816_v22  ;;  %838 = vmatpush3.bf16.msra.mxu1 %v816_v22  ;;  %v54_v22 = vld [vmem:[%s1392_s0 + $0xf8] sm:$0xff] }
  0x1e   :  { %821 = vmatprep.subr.bf16.mxu0 %v820_v25  ;;  %831 = vmatprep.subr.bf16.mxu1 %v820_v25 }
  0x21   :  { %823 = vmatpush3.bf16.msra.mxu0 %v820_v25  ;;  %839 = vmatpush3.bf16.msra.mxu1 %v820_v25  ;;  %v565_v25 = vld [vmem:[%s1393_s3 + $0x8] sm:$0xff] }
  0x22   :  { %vm567_vm1 = vcmp.ge.f32.partialorder %v565_v25, 0.0 }
  0x24   :  { %697 = vmatmul.mubr.f32.vlgmr.msra.gmra.mrb[0].mxu0 %v24_v26  ;;  %745 = vmatmul.mubr.f32.vlgmr.msra.gmra.mrb[0].mxu1 %v56_v27  ;;  %v568_v26 = vstv %s1394_s4 }
  0x25   :  { %699 = vmatprep.mubr.f32.mxu0 %v25_v28  ;;  %747 = vmatprep.mubr.f32.mxu1 %v57_v29  ;;  %v569_v27 = vmul.f32 %v568_v26, %v564_v24  ;;  %v570_v28 = vmul.f32 %v568_v26, %v565_v25 }
  0x27   :  { %v571_v29 = vsel %vm566_vm0, %v564_v24, %v569_v27 }
  0x28   :  { %700 = vmatmul.mubr.f32.gmra.mrb[2].mxu0 %v26_v30  ;;  %748 = vmatmul.mubr.f32.gmra.mrb[2].mxu1 %v58_v31  ;;  %v572_v30 = vsel %vm567_vm1, %v565_v25, %v570_v28  ;;  %573 = vst [vmem:[%s1395_s6] sm:$0xff] %v571_v29  ;;  %v1133_v31 = vld [vmem:[%s1396_s2] ss:$0 sm:$0xff] }
  0x29   :  { %702 = vmatprep.mubr.f32.mxu0 %v27_v32  ;;  %750 = vmatprep.mubr.f32.mxu1 %v59_v33  ;;  %574 = vst [vmem:[%s1395_s6 + $0x8] sm:$0xff] %v572_v30 }
  0x2c   :  { %703 = vmatmul.mubr.f32.gmra.mrb[4].mxu0 %v28_v34  ;;  %751 = vmatmul.mubr.f32.gmra.mrb[4].mxu1 %v60_v35 }
  0x2d   :  { %705 = vmatprep.mubr.f32.mxu0 %v29_v36  ;;  %753 = vmatprep.mubr.f32.mxu1 %v61_v37 }
  0x30   :  { %706 = vmatmul.mubr.f32.gmra.mrb[6].mxu0 %v30_v38  ;;  %754 = vmatmul.mubr.f32.gmra.mrb[6].mxu1 %v62_v39 }
  0x31   :  { %708 = vmatprep.mubr.f32.mxu0 %v31_v40  ;;  %756 = vmatprep.mubr.f32.mxu1 %v63_v41 }
  0x34   :  { %709 = vmatmul.mubr.f32.gmra.mrb[8].mxu0 %v32_v42  ;;  %757 = vmatmul.mubr.f32.gmra.mrb[8].mxu1 %v64_v43 }
  0x35   :  { %711 = vmatprep.mubr.f32.mxu0 %v33_v44  ;;  %759 = vmatprep.mubr.f32.mxu1 %v65_v45 }
  0x38   :  { %712 = vmatmul.mubr.f32.gmra.mrb[10].mxu0 %v34_v46  ;;  %760 = vmatmul.mubr.f32.gmra.mrb[10].mxu1 %v66_v47 }
  0x39   :  { %714 = vmatprep.mubr.f32.mxu0 %v35_v48  ;;  %762 = vmatprep.mubr.f32.mxu1 %v67_v49 }
  0x3c   :  { %715 = vmatmul.mubr.f32.gmra.mrb[12].mxu0 %v36_v50  ;;  %763 = vmatmul.mubr.f32.gmra.mrb[12].mxu1 %v68_v51 }
  0x3d   :  { %717 = vmatprep.mubr.f32.mxu0 %v37_v52  ;;  %765 = vmatprep.mubr.f32.mxu1 %v69_v53 }
  0x40   :  { %718 = vmatmul.mubr.f32.gmra.mrb[14].mxu0 %v38_v54  ;;  %766 = vmatmul.mubr.f32.gmra.mrb[14].mxu1 %v70_v55 }
  0x41   :  { %720 = vmatprep.mubr.f32.mxu0 %v39_v56  ;;  %768 = vmatprep.mubr.f32.mxu1 %v71_v57 }
  0x44   :  { %721 = vmatmul.mubr.f32.gmra.mrb[16].mxu0 %v40_v58  ;;  %769 = vmatmul.mubr.f32.gmra.mrb[16].mxu1 %v72_v59 }
  0x45   :  { %723 = vmatprep.mubr.f32.mxu0 %v41_v60  ;;  %771 = vmatprep.mubr.f32.mxu1 %v73_v61 }
  0x48   :  { %724 = vmatmul.mubr.f32.gmra.mrb[18].mxu0 %v42_v62  ;;  %772 = vmatmul.mubr.f32.gmra.mrb[18].mxu1 %v74_v63 }
  0x49   :  { %726 = vmatprep.mubr.f32.mxu0 %v43_v0  ;;  %774 = vmatprep.mubr.f32.mxu1 %v75_v1 }
  0x4c   :  { %727 = vmatmul.mubr.f32.gmra.mrb[20].mxu0 %v44_v2  ;;  %775 = vmatmul.mubr.f32.gmra.mrb[20].mxu1 %v76_v3 }
  0x4d   :  { %729 = vmatprep.mubr.f32.mxu0 %v45_v4  ;;  %777 = vmatprep.mubr.f32.mxu1 %v77_v5 }
  0x50   :  { %730 = vmatmul.mubr.f32.gmra.mrb[22].mxu0 %v46_v6  ;;  %778 = vmatmul.mubr.f32.gmra.mrb[22].mxu1 %v78_v7 }
  0x51   :  { %732 = vmatprep.mubr.f32.mxu0 %v47_v8  ;;  %780 = vmatprep.mubr.f32.mxu1 %v79_v9 }
  0x54   :  { %733 = vmatmul.mubr.f32.gmra.mrb[24].mxu0 %v48_v10  ;;  %781 = vmatmul.mubr.f32.gmra.mrb[24].mxu1 %v80_v11 }
  0x55   :  { %735 = vmatprep.mubr.f32.mxu0 %v49_v12  ;;  %783 = vmatprep.mubr.f32.mxu1 %v81_v13 }
  0x58   :  { %736 = vmatmul.mubr.f32.gmra.mrb[26].mxu0 %v50_v14  ;;  %784 = vmatmul.mubr.f32.gmra.mrb[26].mxu1 %v82_v15 }
  0x59   :  { %738 = vmatprep.mubr.f32.mxu0 %v51_v16  ;;  %786 = vmatprep.mubr.f32.mxu1 %v83_v17 }
  0x5c   :  { %739 = vmatmul.mubr.f32.gmra.mrb[28].mxu0 %v52_v18  ;;  %787 = vmatmul.mubr.f32.gmra.mrb[28].mxu1 %v84_v19 }
  0x5d   :  { %741 = vmatprep.mubr.f32.mxu0 %v53_v20  ;;  %789 = vmatprep.mubr.f32.mxu1 %v85_v21 }
  0x60   :  { %742 = vmatmul.mubr.f32.gmra.mrb[30].mxu0 %v54_v22  ;;  %790 = vmatmul.mubr.f32.gmra.mrb[30].mxu1 %v86_v23 }
  0xf7   :  { %v698_v32 = vpop.f32.mrb[0].mxu0  ;;  %v746_v33 = vpop.f32.mrb[0].mxu1 }
  0xf8   :  { %v182_v34 = vadd.f32 %v698_v32, %v1133_v31  ;;  %v342_v35 = vadd.f32 %v746_v33, %v1133_v31  ;;  %v176_v36 = vpop.f32.mrb[1].mxu0  ;;  %v336_v37 = vpop.f32.mrb[1].mxu1 }
  0xf9   :  { %v177_v38 = vadd.f32 %v1133_v31, %v176_v36  ;;  %v337_v39 = vadd.f32 %v1133_v31, %v336_v37 }
  0xfa   :  { %496 = vst [vmem:[%s1397_s5 + $0x8] sm:$0xff] %v182_v34  ;;  %528 = vst [vmem:[%s1397_s5 + $0x108] sm:$0xff] %v342_v35 }
  0xfb   :  { %495 = vst [vmem:[%s1397_s5] sm:$0xff] %v177_v38  ;;  %527 = vst [vmem:[%s1397_s5 + $0x100] sm:$0xff] %v337_v39  ;;  %v701_v40 = vpop.f32.mrb[2].mxu0  ;;  %v749_v41 = vpop.f32.mrb[2].mxu1 }
  0xfc   :  { %v192_v42 = vadd.f32 %v701_v40, %v1133_v31  ;;  %v352_v43 = vadd.f32 %v749_v41, %v1133_v31  ;;  %v186_v44 = vpop.f32.mrb[3].mxu0  ;;  %v346_v45 = vpop.f32.mrb[3].mxu1 }
  0xfd   :  { %v187_v46 = vadd.f32 %v1133_v31, %v186_v44  ;;  %v347_v47 = vadd.f32 %v1133_v31, %v346_v45 }
  0xfe   :  { %498 = vst [vmem:[%s1397_s5 + $0x18] sm:$0xff] %v192_v42  ;;  %530 = vst [vmem:[%s1397_s5 + $0x118] sm:$0xff] %v352_v43 }
  0xff   :  { %497 = vst [vmem:[%s1397_s5 + $0x10] sm:$0xff] %v187_v46  ;;  %529 = vst [vmem:[%s1397_s5 + $0x110] sm:$0xff] %v347_v47  ;;  %v704_v48 = vpop.f32.mrb[4].mxu0  ;;  %v752_v49 = vpop.f32.mrb[4].mxu1 }
 0x100   :  { %v202_v50 = vadd.f32 %v704_v48, %v1133_v31  ;;  %v362_v51 = vadd.f32 %v752_v49, %v1133_v31  ;;  %v196_v52 = vpop.f32.mrb[5].mxu0  ;;  %v356_v53 = vpop.f32.mrb[5].mxu1 }
 0x101   :  { %v197_v54 = vadd.f32 %v1133_v31, %v196_v52  ;;  %v357_v55 = vadd.f32 %v1133_v31, %v356_v53 }
 0x102   :  { %500 = vst [vmem:[%s1397_s5 + $0x28] sm:$0xff] %v202_v50  ;;  %532 = vst [vmem:[%s1397_s5 + $0x128] sm:$0xff] %v362_v51 }
 0x103   :  { %499 = vst [vmem:[%s1397_s5 + $0x20] sm:$0xff] %v197_v54  ;;  %531 = vst [vmem:[%s1397_s5 + $0x120] sm:$0xff] %v357_v55  ;;  %v707_v56 = vpop.f32.mrb[6].mxu0  ;;  %v755_v57 = vpop.f32.mrb[6].mxu1 }
 0x104   :  { %v212_v58 = vadd.f32 %v707_v56, %v1133_v31  ;;  %v372_v59 = vadd.f32 %v755_v57, %v1133_v31  ;;  %v206_v60 = vpop.f32.mrb[7].mxu0  ;;  %v366_v61 = vpop.f32.mrb[7].mxu1 }
 0x105   :  { %v207_v62 = vadd.f32 %v1133_v31, %v206_v60  ;;  %v367_v63 = vadd.f32 %v1133_v31, %v366_v61 }
 0x106   :  { %502 = vst [vmem:[%s1397_s5 + $0x38] sm:$0xff] %v212_v58  ;;  %534 = vst [vmem:[%s1397_s5 + $0x138] sm:$0xff] %v372_v59 }
 0x107   :  { %501 = vst [vmem:[%s1397_s5 + $0x30] sm:$0xff] %v207_v62  ;;  %533 = vst [vmem:[%s1397_s5 + $0x130] sm:$0xff] %v367_v63  ;;  %v710_v0 = vpop.f32.mrb[8].mxu0  ;;  %v758_v1 = vpop.f32.mrb[8].mxu1 }
 0x108   :  { %v222_v2 = vadd.f32 %v710_v0, %v1133_v31  ;;  %v382_v3 = vadd.f32 %v758_v1, %v1133_v31  ;;  %v216_v4 = vpop.f32.mrb[9].mxu0  ;;  %v376_v5 = vpop.f32.mrb[9].mxu1 }
 0x109   :  { %v217_v6 = vadd.f32 %v1133_v31, %v216_v4  ;;  %v377_v7 = vadd.f32 %v1133_v31, %v376_v5 }
 0x10a   :  { %504 = vst [vmem:[%s1397_s5 + $0x48] sm:$0xff] %v222_v2  ;;  %536 = vst [vmem:[%s1397_s5 + $0x148] sm:$0xff] %v382_v3 }
 0x10b   :  { %503 = vst [vmem:[%s1397_s5 + $0x40] sm:$0xff] %v217_v6  ;;  %535 = vst [vmem:[%s1397_s5 + $0x140] sm:$0xff] %v377_v7  ;;  %v713_v8 = vpop.f32.mrb[10].mxu0  ;;  %v761_v9 = vpop.f32.mrb[10].mxu1 }
 0x10c   :  { %v232_v10 = vadd.f32 %v713_v8, %v1133_v31  ;;  %v392_v11 = vadd.f32 %v761_v9, %v1133_v31  ;;  %v226_v12 = vpop.f32.mrb[11].mxu0  ;;  %v386_v13 = vpop.f32.mrb[11].mxu1 }
 0x10d   :  { %v227_v14 = vadd.f32 %v1133_v31, %v226_v12  ;;  %v387_v15 = vadd.f32 %v1133_v31, %v386_v13 }
 0x10e   :  { %506 = vst [vmem:[%s1397_s5 + $0x58] sm:$0xff] %v232_v10  ;;  %538 = vst [vmem:[%s1397_s5 + $0x158] sm:$0xff] %v392_v11 }
 0x10f   :  { %505 = vst [vmem:[%s1397_s5 + $0x50] sm:$0xff] %v227_v14  ;;  %537 = vst [vmem:[%s1397_s5 + $0x150] sm:$0xff] %v387_v15  ;;  %v716_v16 = vpop.f32.mrb[12].mxu0  ;;  %v764_v17 = vpop.f32.mrb[12].mxu1 }
 0x110   :  { %v242_v18 = vadd.f32 %v716_v16, %v1133_v31  ;;  %v402_v19 = vadd.f32 %v764_v17, %v1133_v31  ;;  %v236_v20 = vpop.f32.mrb[13].mxu0  ;;  %v396_v21 = vpop.f32.mrb[13].mxu1 }
 0x111   :  { %v237_v22 = vadd.f32 %v1133_v31, %v236_v20  ;;  %v397_v23 = vadd.f32 %v1133_v31, %v396_v21 }
 0x112   :  { %508 = vst [vmem:[%s1397_s5 + $0x68] sm:$0xff] %v242_v18  ;;  %540 = vst [vmem:[%s1397_s5 + $0x168] sm:$0xff] %v402_v19 }
 0x113   :  { %507 = vst [vmem:[%s1397_s5 + $0x60] sm:$0xff] %v237_v22  ;;  %539 = vst [vmem:[%s1397_s5 + $0x160] sm:$0xff] %v397_v23  ;;  %v719_v24 = vpop.f32.mrb[14].mxu0  ;;  %v767_v25 = vpop.f32.mrb[14].mxu1 }
 0x114   :  { %v252_v26 = vadd.f32 %v719_v24, %v1133_v31  ;;  %v412_v27 = vadd.f32 %v767_v25, %v1133_v31  ;;  %v246_v28 = vpop.f32.mrb[15].mxu0  ;;  %v406_v29 = vpop.f32.mrb[15].mxu1 }
 0x115   :  { %v247_v30 = vadd.f32 %v1133_v31, %v246_v28  ;;  %v407_v32 = vadd.f32 %v1133_v31, %v406_v29 }
 0x116   :  { %510 = vst [vmem:[%s1397_s5 + $0x78] sm:$0xff] %v252_v26  ;;  %542 = vst [vmem:[%s1397_s5 + $0x178] sm:$0xff] %v412_v27 }
 0x117   :  { %509 = vst [vmem:[%s1397_s5 + $0x70] sm:$0xff] %v247_v30  ;;  %541 = vst [vmem:[%s1397_s5 + $0x170] sm:$0xff] %v407_v32  ;;  %v722_v33 = vpop.f32.mrb[16].mxu0  ;;  %v770_v34 = vpop.f32.mrb[16].mxu1 }
 0x118   :  { %v262_v35 = vadd.f32 %v722_v33, %v1133_v31  ;;  %v422_v36 = vadd.f32 %v770_v34, %v1133_v31  ;;  %v256_v37 = vpop.f32.mrb[17].mxu0  ;;  %v416_v38 = vpop.f32.mrb[17].mxu1 }
 0x119   :  { %v257_v39 = vadd.f32 %v1133_v31, %v256_v37  ;;  %v417_v40 = vadd.f32 %v1133_v31, %v416_v38 }
 0x11a   :  { %512 = vst [vmem:[%s1397_s5 + $0x88] sm:$0xff] %v262_v35  ;;  %544 = vst [vmem:[%s1397_s5 + $0x188] sm:$0xff] %v422_v36 }
 0x11b   :  { %511 = vst [vmem:[%s1397_s5 + $0x80] sm:$0xff] %v257_v39  ;;  %543 = vst [vmem:[%s1397_s5 + $0x180] sm:$0xff] %v417_v40  ;;  %v725_v41 = vpop.f32.mrb[18].mxu0  ;;  %v773_v42 = vpop.f32.mrb[18].mxu1 }
 0x11c   :  { %v272_v43 = vadd.f32 %v725_v41, %v1133_v31  ;;  %v432_v44 = vadd.f32 %v773_v42, %v1133_v31  ;;  %v266_v45 = vpop.f32.mrb[19].mxu0  ;;  %v426_v46 = vpop.f32.mrb[19].mxu1 }
 0x11d   :  { %v267_v47 = vadd.f32 %v1133_v31, %v266_v45  ;;  %v427_v48 = vadd.f32 %v1133_v31, %v426_v46 }
 0x11e   :  { %514 = vst [vmem:[%s1397_s5 + $0x98] sm:$0xff] %v272_v43  ;;  %546 = vst [vmem:[%s1397_s5 + $0x198] sm:$0xff] %v432_v44 }
 0x11f   :  { %513 = vst [vmem:[%s1397_s5 + $0x90] sm:$0xff] %v267_v47  ;;  %545 = vst [vmem:[%s1397_s5 + $0x190] sm:$0xff] %v427_v48  ;;  %v728_v49 = vpop.f32.mrb[20].mxu0  ;;  %v776_v50 = vpop.f32.mrb[20].mxu1 }
 0x120   :  { %v282_v51 = vadd.f32 %v728_v49, %v1133_v31  ;;  %v442_v52 = vadd.f32 %v776_v50, %v1133_v31  ;;  %v276_v53 = vpop.f32.mrb[21].mxu0  ;;  %v436_v54 = vpop.f32.mrb[21].mxu1 }
 0x121   :  { %v277_v55 = vadd.f32 %v1133_v31, %v276_v53  ;;  %v437_v56 = vadd.f32 %v1133_v31, %v436_v54 }
 0x122   :  { %516 = vst [vmem:[%s1397_s5 + $0xa8] sm:$0xff] %v282_v51  ;;  %548 = vst [vmem:[%s1397_s5 + $0x1a8] sm:$0xff] %v442_v52 }
 0x123   :  { %515 = vst [vmem:[%s1397_s5 + $0xa0] sm:$0xff] %v277_v55  ;;  %547 = vst [vmem:[%s1397_s5 + $0x1a0] sm:$0xff] %v437_v56  ;;  %v731_v57 = vpop.f32.mrb[22].mxu0  ;;  %v779_v58 = vpop.f32.mrb[22].mxu1 }
 0x124   :  { %v292_v59 = vadd.f32 %v731_v57, %v1133_v31  ;;  %v452_v60 = vadd.f32 %v779_v58, %v1133_v31  ;;  %v286_v61 = vpop.f32.mrb[23].mxu0  ;;  %v446_v62 = vpop.f32.mrb[23].mxu1 }
 0x125   :  { %v287_v63 = vadd.f32 %v1133_v31, %v286_v61  ;;  %v447_v0 = vadd.f32 %v1133_v31, %v446_v62 }
 0x126   :  { %518 = vst [vmem:[%s1397_s5 + $0xb8] sm:$0xff] %v292_v59  ;;  %550 = vst [vmem:[%s1397_s5 + $0x1b8] sm:$0xff] %v452_v60 }
 0x127   :  { %517 = vst [vmem:[%s1397_s5 + $0xb0] sm:$0xff] %v287_v63  ;;  %549 = vst [vmem:[%s1397_s5 + $0x1b0] sm:$0xff] %v447_v0  ;;  %v734_v1 = vpop.f32.mrb[24].mxu0  ;;  %v782_v2 = vpop.f32.mrb[24].mxu1 }
 0x128   :  { %v302_v3 = vadd.f32 %v734_v1, %v1133_v31  ;;  %v462_v4 = vadd.f32 %v782_v2, %v1133_v31  ;;  %v296_v5 = vpop.f32.mrb[25].mxu0  ;;  %v456_v6 = vpop.f32.mrb[25].mxu1 }
 0x129   :  { %v297_v7 = vadd.f32 %v1133_v31, %v296_v5  ;;  %v457_v8 = vadd.f32 %v1133_v31, %v456_v6 }
 0x12a   :  { %520 = vst [vmem:[%s1397_s5 + $0xc8] sm:$0xff] %v302_v3  ;;  %552 = vst [vmem:[%s1397_s5 + $0x1c8] sm:$0xff] %v462_v4 }
 0x12b   :  { %519 = vst [vmem:[%s1397_s5 + $0xc0] sm:$0xff] %v297_v7  ;;  %551 = vst [vmem:[%s1397_s5 + $0x1c0] sm:$0xff] %v457_v8  ;;  %v737_v9 = vpop.f32.mrb[26].mxu0  ;;  %v785_v10 = vpop.f32.mrb[26].mxu1 }
 0x12c   :  { %v312_v11 = vadd.f32 %v737_v9, %v1133_v31  ;;  %v472_v12 = vadd.f32 %v785_v10, %v1133_v31  ;;  %v306_v13 = vpop.f32.mrb[27].mxu0  ;;  %v466_v14 = vpop.f32.mrb[27].mxu1 }
 0x12d   :  { %v307_v15 = vadd.f32 %v1133_v31, %v306_v13  ;;  %v467_v16 = vadd.f32 %v1133_v31, %v466_v14 }
 0x12e   :  { %522 = vst [vmem:[%s1397_s5 + $0xd8] sm:$0xff] %v312_v11  ;;  %554 = vst [vmem:[%s1397_s5 + $0x1d8] sm:$0xff] %v472_v12 }
 0x12f   :  { %521 = vst [vmem:[%s1397_s5 + $0xd0] sm:$0xff] %v307_v15  ;;  %553 = vst [vmem:[%s1397_s5 + $0x1d0] sm:$0xff] %v467_v16  ;;  %v740_v17 = vpop.f32.mrb[28].mxu0  ;;  %v788_v18 = vpop.f32.mrb[28].mxu1 }
 0x130   :  { %v322_v19 = vadd.f32 %v740_v17, %v1133_v31  ;;  %v482_v20 = vadd.f32 %v788_v18, %v1133_v31  ;;  %v316_v21 = vpop.f32.mrb[29].mxu0  ;;  %v476_v22 = vpop.f32.mrb[29].mxu1 }
 0x131   :  { %v317_v23 = vadd.f32 %v1133_v31, %v316_v21  ;;  %v477_v24 = vadd.f32 %v1133_v31, %v476_v22 }
 0x132   :  { %524 = vst [vmem:[%s1397_s5 + $0xe8] sm:$0xff] %v322_v19  ;;  %556 = vst [vmem:[%s1397_s5 + $0x1e8] sm:$0xff] %v482_v20 }
 0x133   :  { %523 = vst [vmem:[%s1397_s5 + $0xe0] sm:$0xff] %v317_v23  ;;  %555 = vst [vmem:[%s1397_s5 + $0x1e0] sm:$0xff] %v477_v24  ;;  %v743_v25 = vpop.f32.mrb[30].mxu0  ;;  %v791_v26 = vpop.f32.mrb[30].mxu1 }
 0x134   :  { %v332_v27 = vadd.f32 %v743_v25, %v1133_v31  ;;  %v492_v28 = vadd.f32 %v791_v26, %v1133_v31  ;;  %v326_v29 = vpop.f32.mrb[31].mxu0  ;;  %v486_v30 = vpop.f32.mrb[31].mxu1 }
 0x135   :  { %v327_v32 = vadd.f32 %v1133_v31, %v326_v29  ;;  %v487_v33 = vadd.f32 %v1133_v31, %v486_v30 }
 0x136   :  { %526 = vst [vmem:[%s1397_s5 + $0xf8] sm:$0xff] %v332_v27  ;;  %558 = vst [vmem:[%s1397_s5 + $0x1f8] sm:$0xff] %v492_v28 }
 0x137   :  { %525 = vst [vmem:[%s1397_s5 + $0xf0] sm:$0xff] %v327_v32  ;;  %557 = vst [vmem:[%s1397_s5 + $0x1f0] sm:$0xff] %v487_v33 }

</bundles_post_ra>
